<compile_context>
chip_gen: v6e
topology: v6e:2x2x1
jax: 0.10.0
libtpu: 0.0.40
codegen_flags: <defaults>
</compile_context>

<pallas_src>
import functools

import jax
import jax.numpy as jnp
import numpy as np
from jax.experimental import pallas as pl
from jax.experimental.pallas import tpu as pltpu


def _round_up(x, m):
    return ((x + m - 1) // m) * m


# ---------------------------------------------------------------------------
# Kernel 1: multi-layer LightGCN propagation + layer-mean for BOTH graphs.
#   h_0 = emb ;  h_{l+1} = dropout(A_hat @ h_l) ;  out = mean_{l=0..K} h_l
# Grid = (graph, layer, row_tile, k_tile); adj tiles stream from HBM (bf16),
# per-layer features live in a bf16 ping-pong VMEM scratch, the mean
# accumulator is f32.
# ---------------------------------------------------------------------------
def _lgn_propagate_kernel(seed_ref, adj_ref, emb_src_ref, emb_init_ref, out_ref,
                          h_buf, acc_buf, mm_acc,
                          *, num_layers, dropout_p, training):
    g = pl.program_id(0)
    l = pl.program_id(1)
    i = pl.program_id(2)
    k = pl.program_id(3)
    nk = pl.num_programs(3)

    use_dropout = bool(training) and float(dropout_p) > 0.0

    # Layer 0 only: stage the embedding tiles (bf16) into the ping-pong buffer.
    @pl.when(jnp.logical_and(l == 0, i == 0))
    def _():
        h_buf[k] = emb_src_ref[...].astype(jnp.bfloat16)

    # Layer 0 only: start the layer mean from the exact f32 embeddings (h_0).
    @pl.when(jnp.logical_and(l == 0, k == 0))
    def _():
        acc_buf[i] = emb_init_ref[...]

    # Reset the per-row-tile matmul accumulator at the start of each k sweep.
    @pl.when(k == 0)
    def _():
        mm_acc[...] = jnp.zeros_like(mm_acc)

    parity = l % 2
    src = h_buf[parity * nk + k]                                   # (T, E) bf16
    mm_acc[...] += jnp.dot(adj_ref[...], src,
                           preferred_element_type=jnp.float32)     # MXU, f32 acc

    # End of the k sweep: finalize h_{l+1} for this row tile.
    @pl.when(k == nk - 1)
    def _():
        h_new = mm_acc[...]
        if use_dropout:
            nl = pl.num_programs(1)
            ni = pl.num_programs(2)
            pltpu.prng_seed(seed_ref[0] + (g * nl + l) * ni + i)
            bits = pltpu.bitcast(pltpu.prng_random_bits(h_new.shape), jnp.uint32)
            thr = jnp.uint32(min(int(float(dropout_p) * 4294967296.0), 4294967295))
            h_new = jnp.where(bits >= thr, h_new * (1.0 / (1.0 - dropout_p)), 0.0)
        h_buf[((l + 1) % 2) * nk + i] = h_new.astype(jnp.bfloat16)  # next-layer src
        acc_new = acc_buf[i] + h_new                                # layer mean (f32)
        acc_buf[i] = acc_new
        out_ref[...] = acc_new * (1.0 / float(num_layers + 1))


def lgn_propagate(adj_hat, emb, *, num_layers, dropout_p, seed, training, tile=128):
    """adj_hat: (G, Np, Np) bf16 pre-normalized adjacency; emb: (G, Np, Ep) f32."""
    G, n_pad, _ = adj_hat.shape
    _, _, e_pad = emb.shape
    assert n_pad % tile == 0 and e_pad % 128 == 0 and num_layers >= 1
    nt = n_pad // tile

    kernel = functools.partial(_lgn_propagate_kernel, num_layers=num_layers,
                               dropout_p=float(dropout_p), training=bool(training))

    # Index-map pinning: once the embedding blocks are no longer needed the
    # index map returns a constant block, so Pallas stops re-DMAing them;
    # steady-state HBM traffic is just the streamed adj tiles.
    adj_spec = pl.BlockSpec((None, tile, tile), lambda g, l, i, k, s: (g, i, k))
    emb_src_spec = pl.BlockSpec(
        (None, tile, e_pad),
        lambda g, l, i, k, s: (g, jnp.where(jnp.logical_and(l == 0, i == 0), k, 0), 0))
    emb_init_spec = pl.BlockSpec(
        (None, tile, e_pad),
        lambda g, l, i, k, s: (g, jnp.where(l == 0, i, 0), 0))
    out_spec = pl.BlockSpec((None, tile, e_pad), lambda g, l, i, k, s: (g, i, 0))

    grid_spec = pltpu.PrefetchScalarGridSpec(
        num_scalar_prefetch=1,
        grid=(G, num_layers, nt, nt),
        in_specs=[adj_spec, emb_src_spec, emb_init_spec],
        out_specs=out_spec,
        scratch_shapes=[
            pltpu.VMEM((2 * nt, tile, e_pad), jnp.bfloat16),   # h ping-pong
            pltpu.VMEM((nt, tile, e_pad), jnp.float32),        # layer-mean acc
            pltpu.VMEM((tile, e_pad), jnp.float32),            # matmul partial
        ])

    return pl.pallas_call(
        kernel,
        out_shape=jax.ShapeDtypeStruct((G, n_pad, e_pad), jnp.float32),
        grid_spec=grid_spec,
        compiler_params=pltpu.CompilerParams(
            dimension_semantics=("parallel", "arbitrary", "arbitrary", "arbitrary"),
            vmem_limit_bytes=32 * 1024 * 1024),
    )(jnp.asarray([seed], jnp.int32), adj_hat, emb, emb)


# ---------------------------------------------------------------------------
# Kernel 2 (fused): in-kernel row gathers + dot scoring + BCEWithLogits (mean)
# + sigmoid distance + MSE counterfactual discrepancy, all in one launch.
# Boolean-mask row selection is realized as fixed-shape weighted means, which
# is numerically identical to selecting the rows first.  All scalar results
# are produced as whole-block (1,1) VMEM stores (keepdims reductions).
# TODO(synk): for embedding tables too large for VMEM, switch the in-kernel
# gather to a PrefetchScalarGridSpec + pl.Element row-gather stream.
# ---------------------------------------------------------------------------
def _fused_loss_kernel(uidx_ref, iidx_ref, y_ref, wc_ref, wt_ref, wall_ref,
                       feat_ref, cl_ref, cd_ref, tl_ref, td_ref, dl_ref,
                       *, n_pairs, emb_size):
    m_pad = uidx_ref.shape[0]
    n_pad = feat_ref.shape[1]

    # Row gathers as exact one-hot f32 MXU matmuls (0/1 weights -> exact).
    col = jax.lax.broadcasted_iota(jnp.int32, (m_pad, n_pad), 1)
    onehot_u = (col == uidx_ref[...]).astype(jnp.float32)          # (M, Np)
    onehot_i = (col == iidx_ref[...]).astype(jnp.float32)

    feat_c = feat_ref[0]                                           # (Np, Ep) f32
    feat_t = feat_ref[1]
    uc = jnp.dot(onehot_u, feat_c, preferred_element_type=jnp.float32)
    ic = jnp.dot(onehot_i, feat_c, preferred_element_type=jnp.float32)
    ut = jnp.dot(onehot_u, feat_t, preferred_element_type=jnp.float32)
    it = jnp.dot(onehot_i, feat_t, preferred_element_type=jnp.float32)

    y = y_ref[...]                                                 # (M, 1)
    wc = wc_ref[...]
    wt = wt_ref[...]
    wall = wall_ref[...]

    # Padded embedding columns are exactly zero, so sums over Ep == sums over E.
    s_c = jnp.sum(uc * ic, axis=-1, keepdims=True)                 # logits (M, 1)
    s_t = jnp.sum(ut * it, axis=-1, keepdims=True)

    def bce(s):   # numerically stable BCE-with-logits (matches torch)
        return jnp.maximum(s, 0.0) - s * y + jnp.log(1.0 + jnp.exp(-jnp.abs(s)))

    prob_c = 1.0 / (1.0 + jnp.exp(-s_c))
    prob_t = 1.0 / (1.0 + jnp.exp(-s_t))
    inv_c = 1.0 / jnp.sum(wc, keepdims=True)     # (1,1) = 1 / (#unmasked rows * L)
    inv_t = 1.0 / jnp.sum(wt, keepdims=True)

    cl_ref[...] = jnp.sum(wc * bce(s_c), keepdims=True) * inv_c
    cd_ref[...] = jnp.sum(wc * jnp.abs(prob_c - y), keepdims=True) * inv_c
    tl_ref[...] = jnp.sum(wt * bce(s_t), keepdims=True) * inv_t
    td_ref[...] = jnp.sum(wt * jnp.abs(prob_t - y), keepdims=True) * inv_t

    d_u = jnp.sum(wall * jnp.sum((uc - ut) ** 2, axis=-1, keepdims=True), keepdims=True)
    d_i = jnp.sum(wall * jnp.sum((ic - it) ** 2, axis=-1, keepdims=True), keepdims=True)
    dl_ref[...] = (d_u + d_i) * (1.0 / float(n_pairs * emb_size))


def fused_losses(feat_pad, user_idx, item_idx, label, mask, *, emb_size):
    B, L = label.shape
    M = B * L
    m_pad = _round_up(M, 8)

    def col(x, dtype):
        x = jnp.asarray(x).astype(dtype).reshape(M, 1)
        return jnp.pad(x, ((0, m_pad - M), (0, 0)))

    wc = jnp.broadcast_to((~mask)[:, None], (B, L)).astype(jnp.float32)
    wt = jnp.broadcast_to(mask[:, None], (B, L)).astype(jnp.float32)
    wall = jnp.pad(jnp.ones((M, 1), jnp.float32), ((0, m_pad - M), (0, 0)))

    outs = pl.pallas_call(
        functools.partial(_fused_loss_kernel, n_pairs=M, emb_size=emb_size),
        out_shape=tuple(jax.ShapeDtypeStruct((1, 1), jnp.float32) for _ in range(5)),
        in_specs=[pl.BlockSpec(memory_space=pltpu.MemorySpace.VMEM)] * 7,
        out_specs=tuple(pl.BlockSpec(memory_space=pltpu.MemorySpace.VMEM)
                        for _ in range(5)),
    )(col(user_idx, jnp.int32), col(item_idx, jnp.int32), col(label, jnp.float32),
      col(wc, jnp.float32), col(wt, jnp.float32), wall, feat_pad)
    return tuple(o[0, 0] for o in outs)


# ---------------------------------------------------------------------------
# Pure-JAX references (correctness checks only).
# ---------------------------------------------------------------------------
def _ref_propagate_bf16(adj_hat_bf16, emb_f32, num_layers):
    """Precision-matched reference: bf16 matmul operands, f32 accumulation."""
    h = emb_f32.astype(jnp.bfloat16)
    acc = emb_f32
    for _ in range(num_layers):
        h_new = jnp.dot(adj_hat_bf16, h, preferred_element_type=jnp.float32)
        acc = acc + h_new
        h = h_new.astype(jnp.bfloat16)
    return acc / (num_layers + 1)


def _ref_propagate_f32(adj, emb, norm, num_layers):
    h, acc = emb, emb
    for _ in range(num_layers):
        h = norm * (adj @ (h * norm))
        acc = acc + h
    return acc / (num_layers + 1)


def _ref_bce(u, v, y):
    s = jnp.sum(u * v, -1)
    per = jnp.maximum(s, 0.0) - s * y + jnp.log(1.0 + jnp.exp(-jnp.abs(s)))
    prob = 1.0 / (1.0 + jnp.exp(-s))
    return jnp.mean(per), jnp.mean(jnp.abs(prob - y))


if __name__ == "__main__":
    # Small, deterministic configuration.
    num_users, num_items, emb_size, num_layers, dropout = 8, 8, 32, 2, 0.0
    N = num_users + num_items
    B, L = 8, 4
    TILE = 128
    N_pad = _round_up(N, TILE)
    E_pad = _round_up(emb_size, 128)

    key = jax.random.PRNGKey(0)
    k_ec, k_et, k_gc, k_gt, k_u, k_i, k_y = jax.random.split(key, 7)

    stdv = 1.0 / float(np.sqrt(emb_size))
    emb_control = jax.random.uniform(k_ec, (N, emb_size), jnp.float32, -stdv, stdv)
    emb_treatment = jax.random.uniform(k_et, (N, emb_size), jnp.float32, -stdv, stdv)

    def make_graph(k):
        # bipartite user-item interactions, symmetric adjacency
        r = (jax.random.uniform(k, (num_users, num_items)) < 0.4).astype(jnp.float32)
        top = jnp.concatenate([jnp.zeros((num_users, num_users), jnp.float32), r], axis=1)
        bot = jnp.concatenate([r.T, jnp.zeros((num_items, num_items), jnp.float32)], axis=1)
        adj = jnp.concatenate([top, bot], axis=0)
        deg = jnp.clip(jnp.sum(adj, axis=1), 1.0, None)          # in_degrees.clamp(min=1)
        norm = jnp.power(deg, -0.5).reshape(N, 1).astype(jnp.float32)
        return adj, norm

    adj_c, norm_c = make_graph(k_gc)
    adj_t, norm_t = make_graph(k_gt)

    user = jax.random.randint(k_u, (B, L), 0, num_users)
    item = jax.random.randint(k_i, (B, L), 0, num_items)
    label = (jax.random.uniform(k_y, (B, L)) < 0.5).astype(jnp.float32)
    mask = jnp.array([False, True, False, True, False, True, False, True])

    # Pre-normalized bf16 adjacency + zero-padded f32 embeddings, stacked.
    def pad2(x, rows, cols):
        return jnp.pad(x, ((0, rows - x.shape[0]), (0, cols - x.shape[1])))

    a_hat_c = norm_c * adj_c * norm_c.T
    a_hat_t = norm_t * adj_t * norm_t.T
    adj_hat = jnp.stack([pad2(a_hat_c, N_pad, N_pad),
                         pad2(a_hat_t, N_pad, N_pad)]).astype(jnp.bfloat16)
    emb_stack = jnp.stack([pad2(emb_control, N_pad, E_pad),
                           pad2(emb_treatment, N_pad, E_pad)])

    # --- LightGCN propagation + layer averaging (one Pallas kernel, both graphs) ---
    feat_pad = lgn_propagate(adj_hat, emb_stack, num_layers=num_layers,
                             dropout_p=dropout, seed=0, training=True, tile=TILE)

    item_g = item + num_users                                    # item = item + self.n_user

    # --- fused scoring / BCE / distance / discrepancy kernel ---
    (control_loss, control_distance, treatment_loss, treatment_distance,
     discrepancy_loss) = fused_losses(feat_pad, user, item_g, label, mask,
                                      emb_size=emb_size)

    result = {
        "control_loss": control_loss,
        "treatment_loss": treatment_loss,
        "discrepancy_loss": discrepancy_loss,
        "control_distance": control_distance,
        "treatment_distance": treatment_distance,
    }
    jax.block_until_ready(result)

    # --- correctness checks ---
    feat_c = feat_pad[0, :N, :emb_size]
    feat_t = feat_pad[1, :N, :emb_size]

    # (a) propagation kernel vs precision-matched (bf16 matmul / f32 acc) reference
    ref_c_pad = _ref_propagate_bf16(adj_hat[0], emb_stack[0], num_layers)
    ref_t_pad = _ref_propagate_bf16(adj_hat[1], emb_stack[1], num_layers)
    np.testing.assert_allclose(np.asarray(feat_pad[0]), np.asarray(ref_c_pad),
                               rtol=2e-3, atol=1e-5)
    np.testing.assert_allclose(np.asarray(feat_pad[1]), np.asarray(ref_t_pad),
                               rtol=2e-3, atol=1e-5)

    # (b) semantic check vs the full-f32 LightGCN reference (loose: bf16 rounding)
    rfc = _ref_propagate_f32(adj_c, emb_control, norm_c, num_layers)
    rft = _ref_propagate_f32(adj_t, emb_treatment, norm_t, num_layers)
    np.testing.assert_allclose(np.asarray(feat_c), np.asarray(rfc), rtol=5e-2, atol=1e-2)
    np.testing.assert_allclose(np.asarray(feat_t), np.asarray(rft), rtol=5e-2, atol=1e-2)

    # (c) fused loss kernel vs pure-JAX losses computed from the kernel's features
    rcl, rcd = _ref_bce(feat_c[user[~mask]], feat_c[item_g[~mask]], label[~mask])
    rtl, rtd = _ref_bce(feat_t[user[mask]], feat_t[item_g[mask]], label[mask])
    rdisc = (jnp.mean((feat_c[user] - feat_t[user]) ** 2)
             + jnp.mean((feat_c[item_g] - feat_t[item_g]) ** 2))
    np.testing.assert_allclose(float(control_loss), float(rcl), rtol=1e-3, atol=1e-5)
    np.testing.assert_allclose(float(control_distance), float(rcd), rtol=1e-3, atol=1e-5)
    np.testing.assert_allclose(float(treatment_loss), float(rtl), rtol=1e-3, atol=1e-5)
    np.testing.assert_allclose(float(treatment_distance), float(rtd), rtol=1e-3, atol=1e-5)
    np.testing.assert_allclose(float(discrepancy_loss), float(rdisc), rtol=1e-3, atol=1e-5)

    print("KERNEL_OK")
</pallas_src>

<mosaic_0001>
module attributes {stable_mosaic.version = 11 : i64} {
  func.func @_lgn_propagate_kernel(%arg0: i32, %arg1: i32, %arg2: i32, %arg3: i32, %arg4: memref<1xi32, #tpu.memory_space<smem>>, %arg5: memref<1x128x128xbf16, #tpu.memory_space<vmem>>, %arg6: memref<1x128x128xf32, #tpu.memory_space<vmem>>, %arg7: memref<1x128x128xf32, #tpu.memory_space<vmem>>, %arg8: memref<1x128x128xf32, #tpu.memory_space<vmem>>, %arg9: memref<2x128x128xbf16, #tpu.memory_space<vmem>>, %arg10: memref<1x128x128xf32, #tpu.memory_space<vmem>>, %arg11: memref<128x128xf32, #tpu.memory_space<vmem>>) attributes {dimension_semantics = [#tpu.dimension_semantics<parallel>, #tpu.dimension_semantics<arbitrary>, #tpu.dimension_semantics<arbitrary>, #tpu.dimension_semantics<arbitrary>], iteration_bounds = array<i64: 2, 2, 1, 1>, scalar_prefetch = 1 : i64, scratch_operands = 3 : i64, tpu.core_type = #tpu.core_type<tc>, window_params = [{transform_indices = @transform_0, window_bounds = array<i64: 1, 128, 128>}, {transform_indices = @transform_1, window_bounds = array<i64: 1, 128, 128>}, {transform_indices = @transform_2, window_bounds = array<i64: 1, 128, 128>}, {transform_indices = @transform_3, window_bounds = array<i64: 1, 128, 128>}]} {
    %c0_i32 = arith.constant 0 : i32
    %0 = arith.cmpi eq, %arg1, %c0_i32 : i32
    %c0_i32_0 = arith.constant 0 : i32
    %1 = arith.cmpi eq, %arg2, %c0_i32_0 : i32
    %2 = arith.andi %0, %1 : i1
    %3 = arith.extui %2 : i1 to i32
    %c0_i32_1 = arith.constant 0 : i32
    %4 = arith.cmpi ne, %3, %c0_i32_1 : i32
    scf.if %4 {
      %c0_22 = arith.constant 0 : index
      %c0_23 = arith.constant 0 : index
      %c0_24 = arith.constant 0 : index
      %37 = vector.load %arg6[%c0_22, %c0_23, %c0_24] : memref<1x128x128xf32, #tpu.memory_space<vmem>>, vector<1x128x128xf32>
      %38 = vector.shape_cast %37 : vector<1x128x128xf32> to vector<128x128xf32>
      %39 = arith.truncf %38 : vector<128x128xf32> to vector<128x128xbf16>
      %40 = arith.index_cast %arg3 : i32 to index
      %c0_25 = arith.constant 0 : index
      %c0_26 = arith.constant 0 : index
      %41 = vector.load %arg9[%40, %c0_25, %c0_26] : memref<2x128x128xbf16, #tpu.memory_space<vmem>>, vector<1x128x128xbf16>
      %42 = vector.shape_cast %41 : vector<1x128x128xbf16> to vector<128x128xbf16>
      %43 = vector.shape_cast %39 : vector<128x128xbf16> to vector<1x128x128xbf16>
      tpu.vector_store %arg9[%40, %c0_25, %c0_26], %43 {strides = array<i32>} : memref<2x128x128xbf16, #tpu.memory_space<vmem>>, vector<1x128x128xbf16>,
    } else {
    }
    %c0_i32_2 = arith.constant 0 : i32
    %5 = arith.cmpi eq, %arg1, %c0_i32_2 : i32
    %c0_i32_3 = arith.constant 0 : i32
    %6 = arith.cmpi eq, %arg3, %c0_i32_3 : i32
    %7 = arith.andi %5, %6 : i1
    %8 = arith.extui %7 : i1 to i32
    %c0_i32_4 = arith.constant 0 : i32
    %9 = arith.cmpi ne, %8, %c0_i32_4 : i32
    scf.if %9 {
      %c0_22 = arith.constant 0 : index
      %c0_23 = arith.constant 0 : index
      %c0_24 = arith.constant 0 : index
      %37 = vector.load %arg7[%c0_22, %c0_23, %c0_24] : memref<1x128x128xf32, #tpu.memory_space<vmem>>, vector<1x128x128xf32>
      %38 = vector.shape_cast %37 : vector<1x128x128xf32> to vector<128x128xf32>
      %39 = arith.index_cast %arg2 : i32 to index
      %c0_25 = arith.constant 0 : index
      %c0_26 = arith.constant 0 : index
      %40 = vector.load %arg10[%39, %c0_25, %c0_26] : memref<1x128x128xf32, #tpu.memory_space<vmem>>, vector<1x128x128xf32>
      %41 = vector.shape_cast %40 : vector<1x128x128xf32> to vector<128x128xf32>
      %42 = vector.shape_cast %38 : vector<128x128xf32> to vector<1x128x128xf32>
      tpu.vector_store %arg10[%39, %c0_25, %c0_26], %42 {strides = array<i32>} : memref<1x128x128xf32, #tpu.memory_space<vmem>>, vector<1x128x128xf32>,
    } else {
    }
    %c0_i32_5 = arith.constant 0 : i32
    %10 = arith.cmpi eq, %arg3, %c0_i32_5 : i32
    %11 = arith.extui %10 : i1 to i32
    %c0_i32_6 = arith.constant 0 : i32
    %12 = arith.cmpi ne, %11, %c0_i32_6 : i32
    scf.if %12 {
      %cst_22 = arith.constant 0.000000e+00 : f32
      %37 = vector.broadcast %cst_22 : f32 to vector<128x128xf32>
      %c0_23 = arith.constant 0 : index
      %c0_24 = arith.constant 0 : index
      %38 = vector.load %arg11[%c0_23, %c0_24] : memref<128x128xf32, #tpu.memory_space<vmem>>, vector<128x128xf32>
      tpu.vector_store %arg11[%c0_23, %c0_24], %37 {strides = array<i32>} : memref<128x128xf32, #tpu.memory_space<vmem>>, vector<128x128xf32>,
    } else {
    }
    %c2_i32 = arith.constant 2 : i32
    %c0_i32_7 = arith.constant 0 : i32
    %13 = arith.cmpi eq, %c2_i32, %c0_i32_7 : i32
    %c1_i32 = arith.constant 1 : i32
    %14 = arith.select %13, %c1_i32, %c2_i32 : i32
    %15 = arith.remsi %arg1, %14 : i32
    %c0_i32_8 = arith.constant 0 : i32
    %16 = arith.cmpi ne, %15, %c0_i32_8 : i32
    %c0_i32_9 = arith.constant 0 : i32
    %17 = arith.cmpi slt, %15, %c0_i32_9 : i32
    %c0_i32_10 = arith.constant 0 : i32
    %18 = arith.cmpi slt, %14, %c0_i32_10 : i32
    %19 = arith.xori %17, %18 : i1
    %20 = arith.andi %19, %16 : i1
    %21 = arith.addi %15, %14 : i32
    %22 = arith.select %20, %21, %15 : i32
    %c1_i32_11 = arith.constant 1 : i32
    %23 = arith.muli %22, %c1_i32_11 : i32
    %24 = arith.addi %23, %arg3 : i32
    %25 = arith.index_cast %24 : i32 to index
    %c0 = arith.constant 0 : index
    %c0_12 = arith.constant 0 : index
    %26 = vector.load %arg9[%25, %c0, %c0_12] : memref<2x128x128xbf16, #tpu.memory_space<vmem>>, vector<1x128x128xbf16>
    %27 = vector.shape_cast %26 : vector<1x128x128xbf16> to vector<128x128xbf16>
    %c0_13 = arith.constant 0 : index
    %c0_14 = arith.constant 0 : index
    %28 = vector.load %arg11[%c0_13, %c0_14] : memref<128x128xf32, #tpu.memory_space<vmem>>, vector<128x128xf32>
    %c0_15 = arith.constant 0 : index
    %c0_16 = arith.constant 0 : index
    %c0_17 = arith.constant 0 : index
    %29 = vector.load %arg5[%c0_15, %c0_16, %c0_17] : memref<1x128x128xbf16, #tpu.memory_space<vmem>>, vector<1x128x128xbf16>
    %30 = vector.shape_cast %29 : vector<1x128x128xbf16> to vector<128x128xbf16>
    %cst = arith.constant dense<0.000000e+00> : vector<128x128xf32>
    %31 = tpu.matmul %30, %27, %cst {dimension_numbers = #tpu.dot_dimension_numbers<[1], [0], [0], [1], [0, 0, 1, 1], [], []>} : vector<128x128xbf16>, vector<128x128xbf16>, vector<128x128xf32> -> vector<128x128xf32>
    %32 = arith.addf %28, %31 : vector<128x128xf32>
    %c0_18 = arith.constant 0 : index
    %c0_19 = arith.constant 0 : index
    %33 = vector.load %arg11[%c0_18, %c0_19] : memref<128x128xf32, #tpu.memory_space<vmem>>, vector<128x128xf32>
    tpu.vector_store %arg11[%c0_18, %c0_19], %32 {strides = array<i32>} : memref<128x128xf32, #tpu.memory_space<vmem>>, vector<128x128xf32>,
    %c0_i32_20 = arith.constant 0 : i32
    %34 = arith.cmpi eq, %arg3, %c0_i32_20 : i32
    %35 = arith.extui %34 : i1 to i32
    %c0_i32_21 = arith.constant 0 : i32
    %36 = arith.cmpi ne, %35, %c0_i32_21 : i32
    scf.if %36 {
      %c0_22 = arith.constant 0 : index
      %c0_23 = arith.constant 0 : index
      %37 = vector.load %arg11[%c0_22, %c0_23] : memref<128x128xf32, #tpu.memory_space<vmem>>, vector<128x128xf32>
      %38 = arith.truncf %37 : vector<128x128xf32> to vector<128x128xbf16>
      %c1_i32_24 = arith.constant 1 : i32
      %39 = arith.addi %arg1, %c1_i32_24 : i32
      %c2_i32_25 = arith.constant 2 : i32
      %c0_i32_26 = arith.constant 0 : i32
      %40 = arith.cmpi eq, %c2_i32_25, %c0_i32_26 : i32
      %c1_i32_27 = arith.constant 1 : i32
      %41 = arith.select %40, %c1_i32_27, %c2_i32_25 : i32
      %42 = arith.remsi %39, %41 : i32
      %c0_i32_28 = arith.constant 0 : i32
      %43 = arith.cmpi ne, %42, %c0_i32_28 : i32
      %c0_i32_29 = arith.constant 0 : i32
      %44 = arith.cmpi slt, %42, %c0_i32_29 : i32
      %c0_i32_30 = arith.constant 0 : i32
      %45 = arith.cmpi slt, %41, %c0_i32_30 : i32
      %46 = arith.xori %44, %45 : i1
      %47 = arith.andi %46, %43 : i1
      %48 = arith.addi %42, %41 : i32
      %49 = arith.select %47, %48, %42 : i32
      %c1_i32_31 = arith.constant 1 : i32
      %50 = arith.muli %49, %c1_i32_31 : i32
      %51 = arith.addi %50, %arg2 : i32
      %52 = arith.index_cast %51 : i32 to index
      %c0_32 = arith.constant 0 : index
      %c0_33 = arith.constant 0 : index
      %53 = vector.load %arg9[%52, %c0_32, %c0_33] : memref<2x128x128xbf16, #tpu.memory_space<vmem>>, vector<1x128x128xbf16>
      %54 = vector.shape_cast %53 : vector<1x128x128xbf16> to vector<128x128xbf16>
      %55 = vector.shape_cast %38 : vector<128x128xbf16> to vector<1x128x128xbf16>
      tpu.vector_store %arg9[%52, %c0_32, %c0_33], %55 {strides = array<i32>} : memref<2x128x128xbf16, #tpu.memory_space<vmem>>, vector<1x128x128xbf16>,
      %56 = arith.index_cast %arg2 : i32 to index
      %c0_34 = arith.constant 0 : index
      %c0_35 = arith.constant 0 : index
      %57 = vector.load %arg10[%56, %c0_34, %c0_35] : memref<1x128x128xf32, #tpu.memory_space<vmem>>, vector<1x128x128xf32>
      %58 = vector.shape_cast %57 : vector<1x128x128xf32> to vector<128x128xf32>
      %59 = arith.addf %58, %37 : vector<128x128xf32>
      %60 = arith.index_cast %arg2 : i32 to index
      %c0_36 = arith.constant 0 : index
      %c0_37 = arith.constant 0 : index
      %61 = vector.load %arg10[%60, %c0_36, %c0_37] : memref<1x128x128xf32, #tpu.memory_space<vmem>>, vector<1x128x128xf32>
      %62 = vector.shape_cast %61 : vector<1x128x128xf32> to vector<128x128xf32>
      %63 = vector.shape_cast %59 : vector<128x128xf32> to vector<1x128x128xf32>
      tpu.vector_store %arg10[%60, %c0_36, %c0_37], %63 {strides = array<i32>} : memref<1x128x128xf32, #tpu.memory_space<vmem>>, vector<1x128x128xf32>,
      %cst_38 = arith.constant 0.333333343 : f32
      %64 = vector.broadcast %cst_38 : f32 to vector<128x128xf32>
      %65 = arith.mulf %59, %64 : vector<128x128xf32>
      %c0_39 = arith.constant 0 : index
      %c0_40 = arith.constant 0 : index
      %c0_41 = arith.constant 0 : index
      %66 = vector.load %arg8[%c0_39, %c0_40, %c0_41] : memref<1x128x128xf32, #tpu.memory_space<vmem>>, vector<1x128x128xf32>
      %67 = vector.shape_cast %66 : vector<1x128x128xf32> to vector<128x128xf32>
      %68 = vector.shape_cast %65 : vector<128x128xf32> to vector<1x128x128xf32>
      tpu.vector_store %arg8[%c0_39, %c0_40, %c0_41], %68 {strides = array<i32>} : memref<1x128x128xf32, #tpu.memory_space<vmem>>, vector<1x128x128xf32>,
    } else {
    }
    return
  }
  func.func @transform_0(%arg0: i32, %arg1: i32, %arg2: i32, %arg3: i32, %arg4: memref<1xi32, #tpu.memory_space<smem>>) -> (i32, i32, i32) {
    %c0_i32 = arith.constant 0 : i32
    return %arg0, %arg2, %arg3 : i32, i32, i32
  }
  func.func @transform_1(%arg0: i32, %arg1: i32, %arg2: i32, %arg3: i32, %arg4: memref<1xi32, #tpu.memory_space<smem>>) -> (i32, i32, i32) {
    %c0_i32 = arith.constant 0 : i32
    %0 = arith.cmpi eq, %arg1, %c0_i32 : i32
    %c0_i32_0 = arith.constant 0 : i32
    %1 = arith.cmpi eq, %arg2, %c0_i32_0 : i32
    %2 = arith.andi %0, %1 : i1
    %c0_i32_1 = arith.constant 0 : i32
    %3 = arith.select %2, %arg3, %c0_i32_1 : i32
    %c0_i32_2 = arith.constant 0 : i32
    %c0_i32_3 = arith.constant 0 : i32
    return %arg0, %3, %c0_i32_2 : i32, i32, i32
  }
  func.func @transform_2(%arg0: i32, %arg1: i32, %arg2: i32, %arg3: i32, %arg4: memref<1xi32, #tpu.memory_space<smem>>) -> (i32, i32, i32) {
    %c0_i32 = arith.constant 0 : i32
    %0 = arith.cmpi eq, %arg1, %c0_i32 : i32
    %c0_i32_0 = arith.constant 0 : i32
    %1 = arith.select %0, %arg2, %c0_i32_0 : i32
    %c0_i32_1 = arith.constant 0 : i32
    %c0_i32_2 = arith.constant 0 : i32
    return %arg0, %1, %c0_i32_1 : i32, i32, i32
  }
  func.func @transform_3(%arg0: i32, %arg1: i32, %arg2: i32, %arg3: i32, %arg4: memref<1xi32, #tpu.memory_space<smem>>) -> (i32, i32, i32) {
    %c0_i32 = arith.constant 0 : i32
    %c0_i32_0 = arith.constant 0 : i32
    return %arg0, %arg2, %c0_i32 : i32, i32, i32
  }
}

</mosaic_0001>

<bundles_post_ra>
// kernel: tpu_custom_call.1
= control target key start
LH: loop header
LB: loop body
LE: loop exit
PB: predicated region body
PF: predicated region fallthrough
CT: control target
= control target key end

     0   :  { %s2108_s0 = inlined_call_operand.<no memory space> [shape: s32[1], index: 0, kind: input, shape index: {}]   ;;  %s2109_s1 = inlined_call_operand.hbm [shape: bf16[2,128,128], index: 1, kind: input, shape index: {}]   ;;  %s2110_s2 = inlined_call_operand.hbm [shape: f32[2,128,128], index: 2, kind: input, shape index: {}]   ;;  %s2111_s3 = inlined_call_operand.hbm [shape: f32[2,128,128], index: 3, kind: input, shape index: {}]   ;;  %s2112_s4 = inlined_call_operand.hbm [shape: f32[2,128,128], index: 4, kind: output, shape index: {}]  }
   0x1   :  { %2118 = sst [smem:[#allocation22_spill]] %s2110_s2 }
   0x2   :  { %10 = vsyncpa [#allocation8], 0 }
   0x3   :  { %12 = vsyncpa [#allocation8 + $0x1], 0 }
   0x4   :  { %13 = vsyncpa [#allocation11], 0 }
   0x5   :  { %15 = vsyncpa [#allocation11 + $0x1], 0 }
   0x6   :  { %16 = vsyncpa [#allocation9], 0 }
   0x7   :  { %18 = vsyncpa [#allocation9 + $0x1], 0  ;;  %s1786_s15 = smov 0   ;;  %s1788_s0 = smov 0  }
   0x8   :  { %s1790_s16 = smov 0   ;;  %s1792_s17 = smov 0  }
   0x9   :  { %s1794_s18 = smov 0   ;;  %s1796_s19 = smov 0  }
   0xa   :  { %s1798_s20 = smov 0   ;;  %s1800_s21 = smov 0  }
   0xb LB: > { %2119 = sst [smem:[#allocation17_spill]] %s1729_s16  ;;  %s1827_s22 = sadd.s32 4294967295, %s1749_s21   ;;  %s1749_s21 = sphi %s1800_s21, %s24_s21   ;;  %s1745_s20 = sphi %s1798_s20, %s2141_s20   ;;  %s1741_s19 = sphi %s1796_s19, %s2136_s19   ;;  %s1737_s18 = sphi %s1794_s18, %s2140_s18   ;;  %s1733_s17 = sphi %s1792_s17, %s2135_s17   ;;  %s1729_s16 = sphi %s1790_s16, %s2134_s16   ;;  %s1725_s0 = sphi %s1788_s0, %s2139_s0   ;;  %s1721_s15 = sphi %s1786_s15, %s2138_s15  }
   0xc   : > { %2120 = sst [smem:[#allocation18_spill]] %s1741_s19  ;;  %s1169_s23 = sadd.s32 4294967294, %s1749_s21  }
   0xd   : > { %s46_s24 = sadd.s32 1, %s1741_s19  ;;  %s50_s25 = sadd.s32 1, %s1745_s20 }
   0xe   : > { %p48_p0 = scmp.ge.s32.totalorder %s46_s24, 2  ;;  %s61_s26 = sadd.s32 1, %s1729_s16 }
   0xf   : > { %p68_p1 = scmp.ne.s32.totalorder %s1729_s16, %s1725_s0  ;;  %p69_p2 = scmp.eq.s32.totalorder %s1749_s21, 0 }
  0x10   : > { %s2143_s24 = smov (%p48_p0, %s46_s24), 0  ;;  %s2145_s25 = smov (!%p48_p0, %s50_s25), %s1745_s20 }
  0x11   : > { %2121 = sst [smem:[#allocation19_spill]] %s2143_s24  ;;  %p1839_p3 = por %p69_p2, %p68_p1 }
  0x12   : > { %p74_p4 = scmp.ne.s32.totalorder %s1725_s0, %s1721_s15  ;;  %p52_p5 = scmp.ge.s32.totalorder %s2145_s25, 2 }
  0x13   : > { %p75_p6 = scmp.eq.s32.totalorder %s1827_s22, 0  ;;  %p170_p7 = scmp.eq.s32.totalorder %s1827_s22, 3 }
  0x14   : > { %p176_p8 = scmp.eq.s32.totalorder %s1169_s23, 3  ;;  %s2147_s25 = smov (%p52_p5, %s2145_s25), 0 }
  0x15   : > { %2123 = sst [smem:[#allocation20_spill]] %s2147_s25  ;;  %p1849_p9 = por %p75_p6, %p74_p4 }
  0x16   : > { %p1853_p10 = por %p170_p7, %p68_p1  ;;  %s54_s30 = ssub.s32 %s1745_s20, %s2147_s25 }
  0x17   : > { %p1859_p11 = por %p176_p8, %p74_p4  ;;  %p59_p12 = scmp.eq.s32.totalorder %s54_s30, 0 }
  0x18   : > { %p1477_p13 = scmp.lt.s32.totalorder %s1749_s21, 4  ;;  %s1865_s6 = sand.u32 1, %s1729_s16  }
  0x19   : > { %s1868_s7 = scalar_select %p59_p12, %s1729_s16, %s61_s26  }
  0x1a   : > { %p1872_p0 = pnand %p1477_p13, %p1839_p3  ;;  %s220_s9 = sand.u32 1, %s1749_s21  }
  0x1b   : > { %2127 = sst [smem:[#allocation21_spill]] %s1868_s7  ;;  %s1177_s10 = sshll.u32 %s1865_s6, 7 }
  0x1c   : > { %s1258_s11 = sshll.u32 %s1745_s20, 11  ;;  %s224_s12 = scalar_lea.vmem [#allocation10], %s1177_s10 }
  0x1d   : > { %s238_s13 = sshll.u32 %s224_s12, 4  ;;  %s2129_s2 = sld [smem:[#allocation22_spill]]  ;;  %s239_s13 = int_to_ptr.vmem [resolvable:$true] %s238_s13 }
  0x1e   : > { %s1882_s25 = scalar_lea.sflag [#allocation11], %s220_s9  ;;  %p1567_p1 = pneg %p1872_p0 }
  0x1f   : > { %s1578_s26 = scalar_lea.vmem %s239_s13, 2048  ;;  %s1751_s27 = smov [#allocation10]  }
  0x20   : > { %p1579_p2 = scmp.ne.s32.totalorder %s239_s13, %s1578_s26  ;;  %s1583_s24 = sshll.u32 %s1751_s27, 4  ;;  %s1584_s24 = int_to_ptr.vmem [resolvable:$false] %s1583_s24 }
  0x21   : > { %s1585_s19 = scalar_lea.vmem %s1584_s24, 4096  ;;  %p1586_p5 = scmp.lt.s32.totalorder %s239_s13, %s1584_s24 }
  0x22   : > { %p1581_p3 = pnand %p1579_p2, %p1567_p1  ;;  %p1587_p6 = scmp.lt.s32.totalorder %s1585_s19, %s1578_s26 }
  0x23   : > { %s237_s30 = scalar_lea.hbm %s2129_s2, %s1258_s11 }
  0x24   : > { %p1582_p4 = pneg %p1581_p3  ;;  %p1588_p7 = por %p1587_p6, %p1586_p5 }
  0x26   : > { %p1589_p8 = pnand %p1588_p7, %p1582_p4 }
  0x28   : > { %1592 = shalt.err (!%p1589_p8)
}
  0x29   : > { %s2116_s12 = smov 128   ;;  %s2117_s9 = smov 8  }
  0x2a   : > { %1469 = dma.hbm_to_vmem [thread:$0]  (!%p1872_p0), %s237_s30, 2048, %s239_s13, %s1882_s25, %s2116_s12, %s2116_s12, %s2117_s9  }
  0x2b   : > { %s1898_s19 = scalar_lea.hbm %s2111_s3, %s1258_s11  ;;  %s252_s23 = scalar_lea.vmem [#allocation12], %s1177_s10 }
  0x2c   : > { %s263_s26 = sshll.u32 %s252_s23, 4  ;;  %p1184_p12 = scmp.ge.s32.totalorder %s1749_s21, 1  ;;  %s1901_s26 = int_to_ptr.vmem [resolvable:$true] %s263_s26 }
  0x2d   : > { %p271_p13 = scmp.lt.s32.totalorder %s1749_s21, 5  ;;  %s1174_s2 = sshll.u32 %s1865_s6, 6 }
  0x2e   : > { %s1256_s7 = sshll.u32 %s1745_s20, 10  ;;  %s200_s14 = scalar_lea.vmem [#allocation7], %s1174_s2 }
  0x2f   : > { %p1904_p2 = pnand %p1184_p12, %p271_p13  ;;  %s209_s30 = scalar_lea.hbm %s2109_s1, %s1256_s7 }
  0x30   : > { %s210_s11 = sshll.u32 %s200_s14, 4  ;;  %s197_s24 = scalar_lea.sflag [#allocation8], %s1865_s6  ;;  %s211_s11 = int_to_ptr.vmem [resolvable:$true] %s210_s11 }
  0x31   : > { %s1606_s10 = scalar_lea.vmem %s211_s11, 1024  ;;  %s1754_s23 = smov [#allocation7]  }
  0x32   : > { %p1607_p3 = scmp.ne.s32.totalorder %s211_s11, %s1606_s10  ;;  %s1611_s12 = sshll.u32 %s1754_s23, 4  ;;  %s1612_s12 = int_to_ptr.vmem [resolvable:$false] %s1611_s12 }
  0x33   : > { %s1613_s9 = scalar_lea.vmem %s1612_s12, 2048  ;;  %p1614_p6 = scmp.lt.s32.totalorder %s211_s11, %s1612_s12 }
  0x34   : > { %p1609_p4 = pnand %p1607_p3, %p1567_p1  ;;  %p1615_p7 = scmp.lt.s32.totalorder %s1613_s9, %s1606_s10 }
  0x36   : > { %p1610_p5 = pneg %p1609_p4  ;;  %p1616_p8 = por %p1615_p7, %p1614_p6 }
  0x38   : > { %p1617_p12 = pnand %p1616_p8, %p1610_p5 }
  0x3a   : > { %1620 = shalt.err (!%p1617_p12)
}
  0x3b   : > { %s1755_s16 = smov 64   ;;  %s1756_s2 = smov 4  }
  0x3c   : > { %1466 = dma.hbm_to_vmem [thread:$0]  (!%p1872_p0), %s209_s30, 1024, %s211_s11, %s197_s24, %s1755_s16, %s1755_s16, %s1756_s2  }
  0x3d   : > { %s1634_s6 = scalar_lea.vmem %s1901_s26, 2048  ;;  %s1757_s7 = smov [#allocation12]  }
  0x3e   : > { %p1635_p13 = scmp.ne.s32.totalorder %s1901_s26, %s1634_s6  ;;  %s1639_s12 = sshll.u32 %s1757_s7, 4  ;;  %s1640_s12 = int_to_ptr.vmem [resolvable:$false] %s1639_s12 }
  0x3f   : > { %s1641_s9 = scalar_lea.vmem %s1640_s12, 4096  ;;  %p1642_p5 = scmp.lt.s32.totalorder %s1901_s26, %s1640_s12 }
  0x40   : > { %p1637_p3 = pnand %p1635_p13, %p1567_p1  ;;  %p1643_p6 = scmp.lt.s32.totalorder %s1641_s9, %s1634_s6 }
  0x42   : > { %p1638_p4 = pneg %p1637_p3  ;;  %p1644_p7 = por %p1643_p6, %p1642_p5 }
  0x44   : > { %p1645_p8 = pnand %p1644_p7, %p1638_p4 }
  0x46   : > { %1648 = shalt.err (!%p1645_p8)
}
  0x47   : > { %s2131_s13 = smov 8   ;;  %s2132_s14 = smov 128  }
  0x48   : > { %1472 = dma.hbm_to_vmem [thread:$0]  (!%p1872_p0), %s1898_s19, 2048, %s1901_s26, %s1882_s25, %s2132_s14, %s2132_s14, %s2131_s13  }
  0x49   : > { %275 = sbr.rel (%p1904_p2) target bundleno = 373 (0x175), region = 32  ;;  %s1936_s30 = sand.u32 (!%p1904_p2), 1, %s1725_s0  }
  0x4a   : > { %s1185_s11 = sshll.u32 (!%p1904_p2), %s1936_s30, 6  ;;  %s278_s24 = scalar_lea.sflag (!%p1904_p2), [#allocation8], %s1936_s30 }
  0x4b   : > { %s1940_s10 = scalar_lea.vmem (!%p1904_p2), [#allocation7], %s1185_s11 }
  0x4e   : > { %1708 = dma.done.wait (%p1849_p9), %s278_s24, 1024  }
  0x4f   : > { %1710 = vsyncadd (%p1849_p9), %s278_s24, 4294966272  ;;  %s286_s25 = sand.u32 1, %s1827_s22   ;;  %s1186_s8 = sshll.u32 %s1936_s30, 7 }
  0x50   : > { %s287_s19 = scalar_lea.sflag [#allocation11], %s286_s25  ;;  %s1948_s26 = scalar_lea.vmem [#allocation10], %s1186_s8 }
  0x51   : > { %1712 = dma.done.wait (%p1849_p9), %s287_s19, 4096  }
  0x52   : > { %1714 = vsyncadd (%p1849_p9), %s287_s19, 4294963200  ;;  %p344_p0 = scmp.eq.s32.totalorder %s1733_s17, 0  ;;  %s1955_s27 = scalar_lea.vmem [#allocation12], %s1186_s8 }
  0x53   : > { %s1957_s23 = scalar_lea.vmem [#allocation13], %s1186_s8  ;;  %v350_v0 = vld [vmem:[%s1948_s26] sm:$0xff] (%p344_p0)  ;;  %v351_v1 = vld [vmem:[%s1948_s26 + $0x8] sm:$0xff] (%p344_p0)  ;;  %v352_v2 = vld [vmem:[%s1948_s26 + $0x10] sm:$0xff] (%p344_p0) }
  0x54   : > { %349 = sbr.rel (!%p344_p0) target bundleno = 92 (0x5c), region = 48  ;;  %v1300_v3 = vpack.c.bf16 (%p344_p0), %v351_v1, %v350_v0  ;;  %v353_v4 = vld [vmem:[%s1948_s26 + $0x18] sm:$0xff] (%p344_p0)  ;;  %v354_v5 = vld [vmem:[%s1948_s26 + $0x20] sm:$0xff] (%p344_p0)  ;;  %v355_v6 = vld [vmem:[%s1948_s26 + $0x28] sm:$0xff] (%p344_p0) }
  0x55   : > { %v1305_v7 = vpack.c.bf16 (%p344_p0), %v353_v4, %v352_v2  ;;  %v1310_v8 = vpack.c.bf16 (%p344_p0), %v355_v6, %v354_v5  ;;  %v356_v9 = vld [vmem:[%s1948_s26 + $0x30] sm:$0xff] (%p344_p0)  ;;  %v357_v10 = vld [vmem:[%s1948_s26 + $0x38] sm:$0xff] (%p344_p0)  ;;  %v358_v11 = vld [vmem:[%s1948_s26 + $0x40] sm:$0xff] (%p344_p0) }
  0x56   : > { %1301 = vst [vmem:[#allocation2] sm:$0xff] (%p344_p0), %v1300_v3   ;;  %v1315_v12 = vpack.c.bf16 (%p344_p0), %v357_v10, %v356_v9  ;;  %v359_v13 = vld [vmem:[%s1948_s26 + $0x48] sm:$0xff] (%p344_p0)  ;;  %v360_v14 = vld [vmem:[%s1948_s26 + $0x50] sm:$0xff] (%p344_p0)  ;;  %v361_v15 = vld [vmem:[%s1948_s26 + $0x58] sm:$0xff] (%p344_p0) }
  0x57   : > { %1377 = vst [vmem:[#allocation2 + $0x8] sm:$0xff] (%p344_p0), %v1305_v7   ;;  %1378 = vst [vmem:[#allocation2 + $0x10] sm:$0xff] (%p344_p0), %v1310_v8   ;;  %v1320_v16 = vpack.c.bf16 (%p344_p0), %v359_v13, %v358_v11  ;;  %v1325_v17 = vpack.c.bf16 (%p344_p0), %v361_v15, %v360_v14  ;;  %v362_v18 = vld [vmem:[%s1948_s26 + $0x60] sm:$0xff] (%p344_p0)  ;;  %v363_v19 = vld [vmem:[%s1948_s26 + $0x68] sm:$0xff] (%p344_p0) }
  0x58   : > { %v364_v20 = vld [vmem:[%s1948_s26 + $0x70] sm:$0xff] (%p344_p0)  ;;  %1379 = vst [vmem:[#allocation2 + $0x18] sm:$0xff] (%p344_p0), %v1315_v12   ;;  %v1330_v21 = vpack.c.bf16 (%p344_p0), %v363_v19, %v362_v18  ;;  %v365_v22 = vld [vmem:[%s1948_s26 + $0x78] sm:$0xff] (%p344_p0) }
  0x59   : > { %1380 = vst [vmem:[#allocation2 + $0x20] sm:$0xff] %v1320_v16   ;;  %1381 = vst [vmem:[#allocation2 + $0x28] sm:$0xff] %v1325_v17   ;;  %v1335_v23 = vpack.c.bf16 %v365_v22, %v364_v20 }
  0x5a   : > { %1382 = vst [vmem:[#allocation2 + $0x30] sm:$0xff] %v1330_v21  }
  0x5b   : > { %1383 = vst [vmem:[#allocation2 + $0x38] sm:$0xff] %v1335_v23  }
  0x5c PF: > { %453 = sbr.rel (!%p344_p0) target bundleno = 101 (0x65), region = 52  ;;  %v454_v24 = vld [vmem:[%s1955_s27] sm:$0xff] (%p344_p0)  ;;  %v455_v25 = vld [vmem:[%s1955_s27 + $0x8] sm:$0xff] (%p344_p0)  ;;  %v456_v26 = vld [vmem:[%s1955_s27 + $0x10] sm:$0xff] (%p344_p0) }
  0x5d   : > { %472 = vst [vmem:[#allocation3 + $0x30] sm:$0xff] (%p344_p0), %v454_v24  ;;  %473 = vst [vmem:[#allocation3] sm:$0xff] (%p344_p0), %v455_v25  ;;  %v457_v27 = vld [vmem:[%s1955_s27 + $0x18] sm:$0xff] (%p344_p0)  ;;  %v458_v28 = vld [vmem:[%s1955_s27 + $0x20] sm:$0xff] (%p344_p0) }
  0x5e   : > { %474 = vst [vmem:[#allocation3 + $0x58] sm:$0xff] (%p344_p0), %v456_v26  ;;  %v459_v29 = vld [vmem:[%s1955_s27 + $0x28] sm:$0xff] (%p344_p0)  ;;  %475 = vst [vmem:[#allocation3 + $0x18] sm:$0xff] (%p344_p0), %v457_v27  ;;  %v460_v30 = vld [vmem:[%s1955_s27 + $0x30] sm:$0xff] (%p344_p0) }
  0x5f   : > { %476 = vst [vmem:[#allocation3 + $0x50] sm:$0xff] (%p344_p0), %v458_v28  ;;  %477 = vst [vmem:[#allocation3 + $0x68] sm:$0xff] (%p344_p0), %v459_v29  ;;  %v461_v31 = vld [vmem:[%s1955_s27 + $0x38] sm:$0xff] (%p344_p0)  ;;  %v462_v32 = vld [vmem:[%s1955_s27 + $0x40] sm:$0xff] (%p344_p0) }
  0x60   : > { %478 = vst [vmem:[#allocation3 + $0x8] sm:$0xff] (%p344_p0), %v460_v30  ;;  %479 = vst [vmem:[#allocation3 + $0x48] sm:$0xff] (%p344_p0), %v461_v31  ;;  %v463_v33 = vld [vmem:[%s1955_s27 + $0x48] sm:$0xff] (%p344_p0)  ;;  %v464_v34 = vld [vmem:[%s1955_s27 + $0x50] sm:$0xff] (%p344_p0) }
  0x61   : > { %480 = vst [vmem:[#allocation3 + $0x40] sm:$0xff] %v462_v32  ;;  %v465_v35 = vld [vmem:[%s1955_s27 + $0x58] sm:$0xff]  ;;  %481 = vst [vmem:[#allocation3 + $0x20] sm:$0xff] %v463_v33  ;;  %v466_v36 = vld [vmem:[%s1955_s27 + $0x60] sm:$0xff] }
  0x62   : > { %482 = vst [vmem:[#allocation3 + $0x10] sm:$0xff] %v464_v34  ;;  %483 = vst [vmem:[#allocation3 + $0x38] sm:$0xff] %v465_v35  ;;  %v467_v37 = vld [vmem:[%s1955_s27 + $0x68] sm:$0xff]  ;;  %v468_v38 = vld [vmem:[%s1955_s27 + $0x70] sm:$0xff] }
  0x63   : > { %484 = vst [vmem:[#allocation3 + $0x60] sm:$0xff] %v466_v36  ;;  %485 = vst [vmem:[#allocation3 + $0x70] sm:$0xff] %v467_v37  ;;  %v469_v39 = vld [vmem:[%s1955_s27 + $0x78] sm:$0xff] }
  0x64   : > { %486 = vst [vmem:[#allocation3 + $0x78] sm:$0xff] %v468_v38  ;;  %487 = vst [vmem:[#allocation3 + $0x28] sm:$0xff] %v469_v39 }
  0x65 PF: > { %p507_p9 = scmp.lt.s32.totalorder %s1733_s17, 0  ;;  %s508_s22 = ssub.s32 0, %s1733_s17  ;;  %v1557_v40 = vld [vmem:[%s1940_s10] sm:$0xff]   ;;  %v1559_v50 = vld [vmem:[%s1940_s10 + $0x8] sm:$0xff]   ;;  %v1561_v52 = vld [vmem:[%s1940_s10 + $0x10] sm:$0xff]  }
  0x66   : > { %s1207_s28 = smin.u32 %s1733_s17, %s508_s22  ;;  %v1558_v41 = vld [vmem:[%s1940_s10 + $0x20] sm:$0xff]   ;;  %1423 = vmatprep.mubr.bf16.mxu0 %v1557_v40  ;;  %v1560_v51 = vld [vmem:[%s1940_s10 + $0x28] sm:$0xff]   ;;  %v1562_v53 = vld [vmem:[%s1940_s10 + $0x30] sm:$0xff]   ;;  %s823_s9 = sadd.s32 1, %s1733_s17 }
  0x67   : > { %s510_s16 = sand.u32 1, %s1207_s28   ;;  %1431 = vmatprep.mubr.bf16.mxu1 %v1558_v41  ;;  %v1563_v54 = vld [vmem:[%s1940_s10 + $0x18] sm:$0xff]   ;;  %s825_s13 = ssub.s32 0, %s823_s9 }
  0x68   : > { %s511_s2 = ssub.s32 0, %s510_s16  ;;  %v1564_v55 = vld [vmem:[%s1940_s10 + $0x38] sm:$0xff]   ;;  %s1228_s14 = smin.u32 %s825_s13, %s823_s9  ;;  %v914_v60 = vld [vmem:[#allocation3 + $0x30] sm:$0xff]  ;;  %v915_v10 = vld [vmem:[#allocation3] sm:$0xff] }
  0x69   : > { %s2149_s2 = smov (!%p507_p9, %s511_s2), %s510_s16  ;;  %s827_s11 = sand.u32 1, %s1228_s14   ;;  %v916_v56 = vld [vmem:[#allocation3 + $0x58] sm:$0xff]  ;;  %v924_v57 = vld [vmem:[#allocation3 + $0x10] sm:$0xff] }
  0x6a   : > { %p1209_p1 = scmp.lt.s32.totalorder %s2149_s2, 0  ;;  %s517_s6 = sadd.s32 2, %s2149_s2  ;;  %v917_v2 = vld [vmem:[#allocation3 + $0x18] sm:$0xff]  ;;  %v918_v30 = vld [vmem:[#allocation3 + $0x50] sm:$0xff]  ;;  %v926_v31 = vld [vmem:[#allocation3 + $0x60] sm:$0xff] }
  0x6b   : > { %p824_p2 = scmp.lt.s32.totalorder %s823_s9, 0  ;;  %s828_s24 = ssub.s32 0, %s827_s11  ;;  %v925_v7 = vld [vmem:[#allocation3 + $0x38] sm:$0xff]  ;;  %v920_v20 = vld [vmem:[#allocation3 + $0x8] sm:$0xff] }
  0x6c   : > { %s2151_s6 = smov (!%p1209_p1, %s517_s6), %s2149_s2  ;;  %v922_v61 = vld [vmem:[#allocation3 + $0x40] sm:$0xff]  ;;  %v928_v21 = vld [vmem:[#allocation3 + $0x78] sm:$0xff]  ;;  %v921_v38 = vld [vmem:[#allocation3 + $0x48] sm:$0xff]  ;;  %s1296_s8 = sshll.u32 %s1737_s18, 11 }
  0x6d   : > { %s1278_s7 = sshll.u32 %s2151_s6, 6  ;;  %s2153_s24 = smov (!%p824_p2, %s828_s24), %s827_s11  ;;  %v923_v15 = vld [vmem:[#allocation3 + $0x20] sm:$0xff] }
  0x6e   : > { %s2000_s12 = scalar_lea.vmem [#allocation2], %s1278_s7  ;;  %p1230_p12 = scmp.lt.s32.totalorder %s2153_s24, 0 }
  0x6f   : > { %v1549_v42 = vld [vmem:[%s2000_s12 + $0x38] sm:$0xff]   ;;  %v1550_v43 = vld [vmem:[%s2000_s12 + $0x30] sm:$0xff]   ;;  %v1551_v44 = vld [vmem:[%s2000_s12 + $0x28] sm:$0xff]   ;;  %s834_s25 = sadd.s32 2, %s2153_s24  ;;  %s1010_s19 = sshll.u32 %s1957_s23, 4  ;;  %s2052_s19 = int_to_ptr.vmem [resolvable:$true] %s1010_s19 }
  0x70   : > { %1407 = vmatprep.subr.bf16.mxu0 %v1549_v42  ;;  %1439 = vmatprep.subr.bf16.mxu1 %v1549_v42  ;;  %v1552_v45 = vld [vmem:[%s2000_s12 + $0x20] sm:$0xff]   ;;  %v1553_v46 = vld [vmem:[%s2000_s12 + $0x18] sm:$0xff]   ;;  %v1554_v47 = vld [vmem:[%s2000_s12 + $0x10] sm:$0xff]   ;;  %s2155_s25 = smov (!%p1230_p12, %s834_s25), %s2153_s24  ;;  %s2050_s27 = scalar_lea.hbm %s2112_s4, %s1296_s8 }
  0x71   : > { %1408 = vmatpush3.bf16.msra.mxu0 %v1549_v42  ;;  %1447 = vmatpush3.bf16.msra.mxu1 %v1549_v42  ;;  %v1555_v48 = vld [vmem:[%s2000_s12 + $0x8] sm:$0xff]   ;;  %v1556_v49 = vld [vmem:[%s2000_s12] sm:$0xff]   ;;  %s1295_s17 = sshll.u32 %s2155_s25, 6  ;;  %s995_s22 = scalar_lea.sflag [#allocation9], %s1936_s30 }
  0x72   : > { %1409 = vmatprep.subr.bf16.mxu0 %v1550_v43  ;;  %1440 = vmatprep.subr.bf16.mxu1 %v1550_v43  ;;  %s2026_s10 = scalar_lea.vmem [#allocation2], %s1295_s17  ;;  %s1649_s28 = scalar_lea.vmem %s2052_s19, 2048 }
  0x73   : > { %p1650_p13 = scmp.ne.s32.totalorder %s2052_s19, %s1649_s28  ;;  %s1758_s16 = smov [#allocation13]  }
  0x74   : > { %s1653_s2 = sshll.u32 %s1758_s16, 4  ;;  %s1654_s2 = int_to_ptr.vmem [resolvable:$false] %s1653_s2 }
  0x75   : > { %1410 = vmatpush3.bf16.msra.mxu0 %v1550_v43  ;;  %1448 = vmatpush3.bf16.msra.mxu1 %v1550_v43  ;;  %v929_v43 = vld [vmem:[#allocation3 + $0x28] sm:$0xff]  ;;  %p1651_p3 = pnand %p1650_p13, %p1853_p10  ;;  %s1655_s6 = scalar_lea.vmem %s1654_s2, 4096 }
  0x76   : > { %1411 = vmatprep.subr.bf16.mxu0 %v1551_v44  ;;  %1441 = vmatprep.subr.bf16.mxu1 %v1551_v44  ;;  %p1656_p5 = scmp.lt.s32.totalorder %s2052_s19, %s1654_s2  ;;  %p1657_p6 = scmp.lt.s32.totalorder %s1655_s6, %s1649_s28 }
  0x77   : > { %p1652_p4 = pneg %p1651_p3 }
  0x78   : > { %p1658_p7 = por %p1657_p6, %p1656_p5 }
  0x79   : > { %1412 = vmatpush3.bf16.msra.mxu0 %v1551_v44  ;;  %1449 = vmatpush3.bf16.msra.mxu1 %v1551_v44 }
  0x7a   : > { %1413 = vmatprep.subr.bf16.mxu0 %v1552_v45  ;;  %1442 = vmatprep.subr.bf16.mxu1 %v1552_v45  ;;  %p1659_p8 = pnand %p1658_p7, %p1652_p4 }
  0x7d   : > { %1414 = vmatpush3.bf16.msra.mxu0 %v1552_v45  ;;  %1450 = vmatpush3.bf16.msra.mxu1 %v1552_v45 }
  0x7e   : > { %1415 = vmatprep.subr.bf16.mxu0 %v1553_v46  ;;  %1443 = vmatprep.subr.bf16.mxu1 %v1553_v46 }
  0x81   : > { %1416 = vmatpush3.bf16.msra.mxu0 %v1553_v46  ;;  %1451 = vmatpush3.bf16.msra.mxu1 %v1553_v46  ;;  %v919_v46 = vld [vmem:[#allocation3 + $0x68] sm:$0xff] }
  0x82   : > { %1417 = vmatprep.subr.bf16.mxu0 %v1554_v47  ;;  %1444 = vmatprep.subr.bf16.mxu1 %v1554_v47 }
  0x85   : > { %1418 = vmatpush3.bf16.msra.mxu0 %v1554_v47  ;;  %1452 = vmatpush3.bf16.msra.mxu1 %v1554_v47 }
  0x86   : > { %1419 = vmatprep.subr.bf16.mxu0 %v1555_v48  ;;  %1445 = vmatprep.subr.bf16.mxu1 %v1555_v48 }
  0x89   : > { %1420 = vmatpush3.bf16.msra.mxu0 %v1555_v48  ;;  %1453 = vmatpush3.bf16.msra.mxu1 %v1555_v48 }
  0x8a   : > { %1421 = vmatprep.subr.bf16.mxu0 %v1556_v49  ;;  %1446 = vmatprep.subr.bf16.mxu1 %v1556_v49 }
  0x8d   : > { %1422 = vmatpush3.bf16.msra.mxu0 %v1556_v49  ;;  %1454 = vmatpush3.bf16.msra.mxu1 %v1556_v49 }
  0x90   : > { %1424 = vmatmul.mubr.bf16.vlgmr.msra.gmra.mxu0 %v1559_v50  ;;  %1432 = vmatmul.mubr.bf16.vlgmr.msra.gmra.mxu1 %v1560_v51  ;;  %v927_v51 = vld [vmem:[#allocation3 + $0x70] sm:$0xff] }
  0x91   : > { %1427 = vmatprep.mubr.bf16.mxu0 %v1561_v52  ;;  %1435 = vmatprep.mubr.bf16.mxu1 %v1562_v53 }
  0x98   : > { %1428 = vmatmul.mubr.bf16.gmra.mxu0 %v1563_v54  ;;  %1436 = vmatmul.mubr.bf16.gmra.mxu1 %v1564_v55 }
 0x150   : > { %v1425_v58 = vpop.f32.mrf.mxu0  ;;  %v1433_v59 = vpop.f32.mrf.mxu1 }
 0x151   : > { %v932_v62 = vadd.f32 %v1425_v58, %v916_v56  ;;  %v940_v63 = vadd.f32 %v1433_v59, %v924_v57 }
 0x152   : > { %v701_v0 = vpop.f32.mrf.mxu0  ;;  %v733_v1 = vpop.f32.mrf.mxu1 }
 0x153   : > { %948 = vst [vmem:[#allocation3 + $0x58] sm:$0xff] %v932_v62  ;;  %v964_v3 = vmul.f32 0.33333334, %v932_v62  ;;  %956 = vst [vmem:[#allocation3 + $0x10] sm:$0xff] %v940_v63  ;;  %v972_v4 = vmul.f32 0.33333334, %v940_v63  ;;  %v930_v5 = vadd.f32 %v914_v60, %v701_v0  ;;  %v938_v6 = vadd.f32 %v922_v61, %v733_v1 }
 0x154   : > { %v1426_v8 = vpop.f32.mrf.mxu0  ;;  %v1434_v9 = vpop.f32.mrf.mxu1 }
 0x155   : > { %980 = vst [vmem:[%s1957_s23 + $0x10] sm:$0xff] %v964_v3  ;;  %988 = vst [vmem:[%s1957_s23 + $0x50] sm:$0xff] %v972_v4  ;;  %v962_v11 = vmul.f32 0.33333334, %v930_v5  ;;  %v970_v12 = vmul.f32 0.33333334, %v938_v6  ;;  %v1345_v13 = vpack.c.bf16 %v1426_v8, %v1425_v58  ;;  %v933_v14 = vadd.f32 %v1426_v8, %v917_v2 }
 0x156   : > { %946 = vst [vmem:[#allocation3 + $0x30] sm:$0xff] %v930_v5  ;;  %954 = vst [vmem:[#allocation3 + $0x40] sm:$0xff] %v938_v6  ;;  %v1365_v16 = vpack.c.bf16 %v1434_v9, %v1433_v59  ;;  %v941_v17 = vadd.f32 %v1434_v9, %v925_v7  ;;  %v704_v18 = vpop.f32.mrf.mxu0  ;;  %v736_v19 = vpop.f32.mrf.mxu1 }
 0x157   : > { %978 = vst [vmem:[%s1957_s23] sm:$0xff] %v962_v11  ;;  %986 = vst [vmem:[%s1957_s23 + $0x40] sm:$0xff] %v970_v12  ;;  %v965_v22 = vmul.f32 0.33333334, %v933_v14  ;;  %v1340_v23 = vpack.c.bf16 %v704_v18, %v701_v0  ;;  %v931_v24 = vadd.f32 %v915_v10, %v704_v18  ;;  %v1360_v25 = vpack.c.bf16 %v736_v19, %v733_v1 }
 0x158   : > { %1384 = vst [vmem:[%s2026_s10 + $0x8] sm:$0xff] %v1345_v13   ;;  %949 = vst [vmem:[#allocation3 + $0x18] sm:$0xff] %v933_v14  ;;  %v973_v26 = vmul.f32 0.33333334, %v941_v17  ;;  %v939_v27 = vadd.f32 %v923_v15, %v736_v19  ;;  %v1429_v28 = vpop.f32.mrf.mxu0  ;;  %v1437_v29 = vpop.f32.mrf.mxu1 }
 0x159   : > { %1388 = vst [vmem:[%s2026_s10 + $0x28] sm:$0xff] %v1365_v16   ;;  %957 = vst [vmem:[#allocation3 + $0x38] sm:$0xff] %v941_v17  ;;  %v963_v32 = vmul.f32 0.33333334, %v931_v24  ;;  %v936_v33 = vadd.f32 %v1429_v28, %v920_v20  ;;  %v944_v34 = vadd.f32 %v1437_v29, %v928_v21 }
 0x15a   : > { %981 = vst [vmem:[%s1957_s23 + $0x18] sm:$0xff] %v965_v22  ;;  %1341 = vst [vmem:[%s2026_s10] sm:$0xff] %v1340_v23   ;;  %v971_v35 = vmul.f32 0.33333334, %v939_v27  ;;  %v717_v36 = vpop.f32.mrf.mxu0  ;;  %v749_v37 = vpop.f32.mrf.mxu1 }
 0x15b   : > { %947 = vst [vmem:[#allocation3] sm:$0xff] %v931_v24  ;;  %1387 = vst [vmem:[%s2026_s10 + $0x20] sm:$0xff] %v1360_v25   ;;  %v968_v39 = vmul.f32 0.33333334, %v936_v33  ;;  %v976_v40 = vmul.f32 0.33333334, %v944_v34  ;;  %v934_v41 = vadd.f32 %v918_v30, %v717_v36  ;;  %v942_v42 = vadd.f32 %v926_v31, %v749_v37 }
 0x15c   : > { %989 = vst [vmem:[%s1957_s23 + $0x58] sm:$0xff] %v973_v26  ;;  %955 = vst [vmem:[#allocation3 + $0x20] sm:$0xff] %v939_v27  ;;  %v1430_v44 = vpop.f32.mrf.mxu0  ;;  %v1438_v45 = vpop.f32.mrf.mxu1 }
 0x15d   : > { %979 = vst [vmem:[%s1957_s23 + $0x8] sm:$0xff] %v963_v32  ;;  %952 = vst [vmem:[#allocation3 + $0x8] sm:$0xff] %v936_v33  ;;  %v966_v47 = vmul.f32 0.33333334, %v934_v41  ;;  %v974_v48 = vmul.f32 0.33333334, %v942_v42  ;;  %v1355_v49 = vpack.c.bf16 %v1430_v44, %v1429_v28  ;;  %v937_v50 = vadd.f32 %v1430_v44, %v921_v38 }
 0x15e   : > { %960 = vst [vmem:[#allocation3 + $0x78] sm:$0xff] %v944_v34  ;;  %987 = vst [vmem:[%s1957_s23 + $0x48] sm:$0xff] %v971_v35  ;;  %v1375_v52 = vpack.c.bf16 %v1438_v45, %v1437_v29  ;;  %v945_v53 = vadd.f32 %v1438_v45, %v929_v43  ;;  %v720_v54 = vpop.f32.mrf.mxu0  ;;  %v752_v55 = vpop.f32.mrf.mxu1 }
 0x15f   : > { %984 = vst [vmem:[%s1957_s23 + $0x30] sm:$0xff] %v968_v39  ;;  %992 = vst [vmem:[%s1957_s23 + $0x70] sm:$0xff] %v976_v40  ;;  %v969_v56 = vmul.f32 0.33333334, %v937_v50  ;;  %v1350_v57 = vpack.c.bf16 %v720_v54, %v717_v36  ;;  %v935_v58 = vadd.f32 %v919_v46, %v720_v54  ;;  %v1370_v59 = vpack.c.bf16 %v752_v55, %v749_v37 }
 0x160   : > { %950 = vst [vmem:[#allocation3 + $0x50] sm:$0xff] %v934_v41  ;;  %958 = vst [vmem:[#allocation3 + $0x60] sm:$0xff] %v942_v42  ;;  %v977_v60 = vmul.f32 0.33333334, %v945_v53  ;;  %v943_v61 = vadd.f32 %v927_v51, %v752_v55 }
 0x161   : > { %982 = vst [vmem:[%s1957_s23 + $0x20] sm:$0xff] %v966_v47  ;;  %990 = vst [vmem:[%s1957_s23 + $0x60] sm:$0xff] %v974_v48  ;;  %v967_v62 = vmul.f32 0.33333334, %v935_v58 }
 0x162   : > { %1386 = vst [vmem:[%s2026_s10 + $0x18] sm:$0xff] %v1355_v49   ;;  %953 = vst [vmem:[#allocation3 + $0x48] sm:$0xff] %v937_v50  ;;  %v975_v63 = vmul.f32 0.33333334, %v943_v61 }
 0x163   : > { %1390 = vst [vmem:[%s2026_s10 + $0x38] sm:$0xff] %v1375_v52   ;;  %961 = vst [vmem:[#allocation3 + $0x28] sm:$0xff] %v945_v53 }
 0x164   : > { %985 = vst [vmem:[%s1957_s23 + $0x38] sm:$0xff] %v969_v56  ;;  %1385 = vst [vmem:[%s2026_s10 + $0x10] sm:$0xff] %v1350_v57  }
 0x165   : > { %951 = vst [vmem:[#allocation3 + $0x68] sm:$0xff] %v935_v58  ;;  %1389 = vst [vmem:[%s2026_s10 + $0x30] sm:$0xff] %v1370_v59  }
 0x166   : > { %993 = vst [vmem:[%s1957_s23 + $0x78] sm:$0xff] %v977_v60  ;;  %959 = vst [vmem:[#allocation3 + $0x70] sm:$0xff] %v943_v61 }
 0x167   : > { %983 = vst [vmem:[%s1957_s23 + $0x28] sm:$0xff] %v967_v62  ;;  %991 = vst [vmem:[%s1957_s23 + $0x68] sm:$0xff] %v975_v63 }
 0x168   : > { %1662 = shalt.err (!%p1659_p8)
}
 0x169   : > { %s1663_s23 = scalar_lea.hbm %s2050_s27, 2048  ;;  %s1667_s9 = scalar_lea.hbm %s2112_s4, 4096 }
 0x16a   : > { %p1664_p0 = scmp.ne.s32.totalorder %s2050_s27, %s1663_s23  ;;  %p1668_p2 = scmp.lt.s32.totalorder %s2050_s27, %s2112_s4 }
 0x16b   : > { %p1669_p12 = scmp.lt.s32.totalorder %s1667_s9, %s1663_s23 }
 0x16c   : > { %p1665_p9 = pnand %p1664_p0, %p1853_p10 }
 0x16d   : > { %p1670_p13 = por %p1669_p12, %p1668_p2 }
 0x16e   : > { %p1666_p1 = pneg %p1665_p9 }
 0x170   : > { %p1671_p3 = pnand %p1670_p13, %p1666_p1 }
 0x172   : > { %1674 = shalt.err (!%p1671_p3)
}
 0x173   : > { %s1759_s11 = smov 128   ;;  %s1760_s24 = smov 8  }
 0x174   : > { %1461 = dma.vmem_to_hbm [thread:$0]  (%p1853_p10), %s2052_s19, 2048, %s2050_s27, %s995_s22, %s1759_s11, %s1759_s11, %s1760_s24  }
 0x175 PF: > { %p1478_p4 = scmp.ge.s32.totalorder %s1749_s21, 2  ;;  %s1025_s25 = sand.u32 1, %s1721_s15  }
 0x176   : > { %s1026_s17 = scalar_lea.sflag [#allocation9], %s1025_s25 }
 0x177   : > { %p1474_p5 = pnand %p1478_p4, %p1859_p11 }
 0x179   : > { %p1475_p6 = pneg %p1474_p5 }
 0x17b   : > { %1716 = dma.done.wait (%p1475_p6), %s1026_s17, 2048  }
 0x17c   : > { %1718 = vsyncadd (%p1475_p6), %s1026_s17, 4294965248  ;;  %s24_s21 = sadd.s32 1, %s1749_s21   ;;  %s2133_s10 = sld [smem:[#allocation17_spill]] }
 0x17d   : > { %p21_p7 = scmp.ge.s32.totalorder %s24_s21, 6   ;;  %s2134_s16 = sld [smem:[#allocation21_spill]] }
 0x17e   : > { %s2135_s17 = sld [smem:[#allocation18_spill]]  ;;  %s2138_s15 = smov %s1725_s0 }
 0x17f   : > { %s2136_s19 = sld [smem:[#allocation19_spill]]  ;;  %s2140_s18 = smov %s1745_s20 }
 0x180   : > { %s2137_s29 = sld [smem:[#allocation20_spill]] }
 0x182   : > { %s2139_s0 = smov %s2133_s10  ;;  %23 = sbr.rel (!%p21_p7) target bundleno = 11 (0xb), region = 122 }
 0x186   : > { %s2141_s20 = smov %s2137_s29 }
 0x187   :  { %1031 = vsyncpa [#allocation8], 1 }
 0x188   :  { %1033 = vsyncpa [#allocation8 + $0x1], 1 }
 0x189   :  { %1034 = vsyncpa [#allocation11], 1 }
 0x18a   :  { %1036 = vsyncpa [#allocation11 + $0x1], 1 }
 0x18b   :  { %1037 = vsyncpa [#allocation9], 1 }
 0x18c   :  { %1039 = vsyncpa [#allocation9 + $0x1], 1 }

</bundles_post_ra>
